<compile_context>
chip_gen: v7x
topology: tpu7x:2x2x1
jax: 0.10.0
libtpu: 0.0.40
codegen_flags: <defaults>
</compile_context>

<pallas_src>
import jax
import jax.numpy as jnp
from jax import lax
from jax.experimental import pallas as pl
from jax.experimental.pallas import tpu as pltpu


def _round_up(x, m):
    return ((x + m - 1) // m) * m


def _discriminator_kernel(z_ref, w1t_ref, b1_ref, w2t_ref, b2_ref, w3_ref, b3_ref,
                          o_ref):
    """One batch tile, feature-major: z (bb, L) -> probabilities stored as (1, bb)."""
    # Layer 1: contract the latent axis of w1t (h1, L) against z (bb, L)
    # -> (h1, bb).  Batch lives on the lane axis from here on.
    h1 = lax.dot_general(
        w1t_ref[...], z_ref[...],
        dimension_numbers=(((1,), (1,)), ((), ())),
        preferred_element_type=jnp.float32) + b1_ref[...]
    h1 = jnp.maximum(h1, 0.01 * h1)          # LeakyReLU(0.01)

    # Layer 2: (h2, h1) @ (h1, bb) -> (h2, bb)
    h2 = jnp.dot(w2t_ref[...], h1.astype(w2t_ref.dtype),
                 preferred_element_type=jnp.float32) + b2_ref[...]
    h2 = jnp.maximum(h2, 0.01 * h2)

    # Layer 3: (1, h2) @ (h2, bb) -> lane-dense (1, bb) logit row (unmasked vst).
    logit = jnp.dot(w3_ref[...], h2.astype(w3_ref.dtype),
                    preferred_element_type=jnp.float32) + b3_ref[...]

    # Sigmoid via tanh (EUP, overflow-safe): sigmoid(x) = 0.5 * (tanh(x/2) + 1)
    o_ref[...] = (0.5 * (jnp.tanh(0.5 * logit) + 1.0)).astype(o_ref.dtype)


def _choose_block_b(B, cap=4096):
    """Largest 256-multiple tile (<= cap) dividing the padded batch, with >=2
    grid steps (>=4 once the batch is large enough, so v7x feeds both TCs)."""
    cap = max(256, (cap // 256) * 256)
    B_pad = _round_up(B, 256)
    if B_pad <= 512:
        return 256
    min_steps = 4 if B_pad >= 1024 else 2
    best = 256
    c = 512
    limit = min(cap, B_pad // min_steps)
    while c <= limit:
        if B_pad % c == 0:
            best = c
        c += 256
    return best


def _vmem_limit_bytes(block_b, latent_dim, h1_dim, h2_dim, z_itemsize):
    """Conservative per-step VMEM estimate -> explicit scoped-VMEM limit."""
    lane = lambda n: _round_up(max(int(n), 1), 128)
    sub = lambda n: _round_up(max(int(n), 1), 8)
    z_tile = 2 * sub(block_b) * lane(latent_dim) * z_itemsize   # double-buffered input
    o_tile = 2 * sub(1) * lane(block_b) * 4                     # double-buffered output
    inter = (sub(h1_dim) + sub(h2_dim)) * lane(block_b) * 4     # h1 / h2 live values
    weights = 512 * 1024                                        # resident params (generous)
    est = int(1.5 * (z_tile + o_tile + 2 * inter)) + weights + (2 << 20)
    # Clamp: >= 16 MiB (v5e scoped default), <= 64 MiB (v7x physical VMEM).
    return max(16 << 20, min(64 << 20, est))


def discriminator_forward(z, params, *, block_b=None, compute_dtype=None,
                          block_b_cap=4096):
    """Full MLP in one Pallas kernel, tiled over the (padded) batch.

    compute_dtype: optionally cast the (tiny) weight matrices, e.g. bf16.  z is
    intentionally NOT cast here: a standalone wrapper cast of z adds an extra
    full HBM read+write of the dominant traffic.  If z already arrives in bf16
    from its producer, just pass it in bf16 (works on v5e/v6e/v7x; accumulation
    stays f32).
    """
    w1, b1, w2, b2, w3, b3 = params
    B, latent_dim = z.shape
    h1_dim = w1.shape[1]
    h2_dim = w2.shape[1]

    # --- batch tile selection + ragged-batch padding ------------------------
    if block_b is None:
        block_b = _choose_block_b(B, cap=block_b_cap)
    assert block_b % 128 == 0, "block_b must be a multiple of 128 (lane-dense output)"
    B_pad = _round_up(B, block_b)
    if B_pad != B:
        # Pad with zeros; padded rows produce finite garbage that is sliced away.
        z = jnp.pad(z, ((0, B_pad - B), (0, 0)))
    grid = (B_pad // block_b,)

    # --- feature-major parameter layouts ------------------------------------
    w1_t = w1.T                        # (h1, latent)
    w2_t = w2.T                        # (h2, h1)
    w3_row = w3.reshape(1, h2_dim)     # (h2, 1) -> (1, h2)
    b1_col = b1.reshape(h1_dim, 1)     # broadcast along lanes (batch)
    b2_col = b2.reshape(h2_dim, 1)
    b3_2d = b3.reshape(1, 1)

    if compute_dtype is not None:
        w1_t = w1_t.astype(compute_dtype)
        w2_t = w2_t.astype(compute_dtype)
        w3_row = w3_row.astype(compute_dtype)

    # Weights/biases never change across grid steps: keep them resident in
    # VMEM (untiled) instead of replicated, double-buffered blocks.
    vmem_resident = pl.BlockSpec(memory_space=pltpu.MemorySpace.VMEM)

    out_row = pl.pallas_call(
        _discriminator_kernel,
        out_shape=jax.ShapeDtypeStruct((1, B_pad), jnp.float32),
        grid_spec=pltpu.PrefetchScalarGridSpec(
            num_scalar_prefetch=0,
            grid=grid,
            in_specs=[
                pl.BlockSpec((block_b, latent_dim), lambda i: (i, 0)),  # z tile
                vmem_resident,   # w1.T (h1, latent)
                vmem_resident,   # b1   (h1, 1)
                vmem_resident,   # w2.T (h2, h1)
                vmem_resident,   # b2   (h2, 1)
                vmem_resident,   # w3   (1, h2)
                vmem_resident,   # b3   (1, 1)
            ],
            out_specs=pl.BlockSpec((1, block_b), lambda i: (0, i)),
        ),
        compiler_params=pltpu.CompilerParams(
            dimension_semantics=("parallel",),
            vmem_limit_bytes=_vmem_limit_bytes(
                block_b, latent_dim, h1_dim, h2_dim, jnp.dtype(z.dtype).itemsize)),
    )(z, w1_t, b1_col, w2_t, b2_col, w3_row, b3_2d)

    # (1, B_pad) lane-dense row -> (B_pad, 1) column (contiguous reshape: free),
    # then drop the padded rows.
    return out_row.reshape(B_pad, 1)[:B]


def init_params(key, latent_dim, h_n_d, dtype=jnp.float32):
    """Deterministic synthetic init (PyTorch-style uniform bounds).

    Weights are stored [in_features, out_features]; biases as [1, out]."""
    h2 = h_n_d // 2
    ks = jax.random.split(key, 6)

    def lin(kw, kb, fan_in, fan_out):
        bound = 1.0 / jnp.sqrt(fan_in)
        w = jax.random.uniform(kw, (fan_in, fan_out), dtype, -bound, bound)
        b = jax.random.uniform(kb, (1, fan_out), dtype, -bound, bound)
        return w, b

    w1, b1 = lin(ks[0], ks[1], latent_dim, h_n_d)
    w2, b2 = lin(ks[2], ks[3], h_n_d, h2)
    w3, b3 = lin(ks[4], ks[5], h2, 1)
    return (w1, b1, w2, b2, w3, b3)


def discriminator_ref(z, params):
    """Pure-JAX reference for correctness checking."""
    w1, b1, w2, b2, w3, b3 = params
    h1 = z @ w1 + b1
    h1 = jnp.where(h1 > 0, h1, 0.01 * h1)
    h2 = h1 @ w2 + b2
    h2 = jnp.where(h2 > 0, h2, 0.01 * h2)
    return jax.nn.sigmoid(h2 @ w3 + b3)


if __name__ == "__main__":
    key = jax.random.PRNGKey(0)
    k_z, k_p, k_z2 = jax.random.split(key, 3)

    latent_dim = 16   # opt.l_d
    h_n_d = 32        # opt.h_n_d
    params = init_params(k_p, latent_dim, h_n_d)

    # Small demo batch (8): padded to one lane-aligned 256-row tile internally.
    z_small = jax.random.normal(k_z, (8, latent_dim), jnp.float32)
    out_small = jax.block_until_ready(discriminator_forward(z_small, params))
    ref_small = discriminator_ref(z_small, params)
    assert out_small.shape == (8, 1)
    assert jnp.allclose(out_small, ref_small, atol=1e-5, rtol=1e-5)

    # Larger ragged batch (1000 -> padded to 1024): exercises the multi-step
    # pipelined grid (4 x 256-row tiles, feature-major intermediates,
    # lane-dense output row) and the padding/slicing path.
    z_big = jax.random.normal(k_z2, (1000, latent_dim), jnp.float32)
    out_big = jax.block_until_ready(discriminator_forward(z_big, params))
    ref_big = discriminator_ref(z_big, params)
    assert out_big.shape == (1000, 1)
    assert jnp.allclose(out_big, ref_big, atol=1e-5, rtol=1e-5)

    print("KERNEL_OK")
</pallas_src>

<mosaic_0001>
module attributes {stable_mosaic.version = 11 : i64} {
  func.func @_discriminator_kernel(%arg0: i32, %arg1: memref<256x16xf32, #tpu.memory_space<vmem>>, %arg2: memref<32x16xf32, #tpu.memory_space<vmem>>, %arg3: memref<32x1xf32, #tpu.memory_space<vmem>>, %arg4: memref<16x32xf32, #tpu.memory_space<vmem>>, %arg5: memref<16x1xf32, #tpu.memory_space<vmem>>, %arg6: memref<1x16xf32, #tpu.memory_space<vmem>>, %arg7: memref<1x1xf32, #tpu.memory_space<vmem>>, %arg8: memref<1x256xf32, #tpu.memory_space<vmem>>) attributes {dimension_semantics = [#tpu.dimension_semantics<parallel>], iteration_bounds = array<i64: 1>, scalar_prefetch = 0 : i64, scratch_operands = 0 : i64, tpu.core_type = #tpu.core_type<tc>, window_params = [{transform_indices = @transform_0, window_bounds = array<i64: 256, 16>}, {pipeline_mode = #tpu.pipeline_mode<synchronous>, transform_indices = @transform_1, window_bounds = array<i64: 32, 16>}, {pipeline_mode = #tpu.pipeline_mode<synchronous>, transform_indices = @transform_2, window_bounds = array<i64: 32, 1>}, {pipeline_mode = #tpu.pipeline_mode<synchronous>, transform_indices = @transform_3, window_bounds = array<i64: 16, 32>}, {pipeline_mode = #tpu.pipeline_mode<synchronous>, transform_indices = @transform_4, window_bounds = array<i64: 16, 1>}, {pipeline_mode = #tpu.pipeline_mode<synchronous>, transform_indices = @transform_5, window_bounds = array<i64: 1, 16>}, {pipeline_mode = #tpu.pipeline_mode<synchronous>, transform_indices = @transform_6, window_bounds = array<i64: 1, 1>}, {transform_indices = @transform_7, window_bounds = array<i64: 1, 256>}]} {
    %c0 = arith.constant 0 : index
    %c0_0 = arith.constant 0 : index
    %0 = vector.load %arg2[%c0, %c0_0] : memref<32x16xf32, #tpu.memory_space<vmem>>, vector<32x16xf32>
    %c0_1 = arith.constant 0 : index
    %c0_2 = arith.constant 0 : index
    %1 = vector.load %arg1[%c0_1, %c0_2] : memref<256x16xf32, #tpu.memory_space<vmem>>, vector<256x16xf32>
    %cst = arith.constant dense<0.000000e+00> : vector<32x256xf32>
    %2 = tpu.matmul %0, %1, %cst {dimension_numbers = #tpu.dot_dimension_numbers<[1], [1], [0], [0], [0, 0, 1, 0], [], []>} : vector<32x16xf32>, vector<256x16xf32>, vector<32x256xf32> -> vector<32x256xf32>
    %c0_3 = arith.constant 0 : index
    %c0_4 = arith.constant 0 : index
    %3 = vector.load %arg3[%c0_3, %c0_4] : memref<32x1xf32, #tpu.memory_space<vmem>>, vector<32x1xf32>
    %4 = vector.broadcast %3 : vector<32x1xf32> to vector<32x256xf32>
    %5 = arith.addf %2, %4 : vector<32x256xf32>
    %cst_5 = arith.constant 0.00999999977 : f32
    %6 = vector.broadcast %cst_5 : f32 to vector<32x256xf32>
    %7 = arith.mulf %6, %5 : vector<32x256xf32>
    %8 = arith.maximumf %5, %7 : vector<32x256xf32>
    %c0_6 = arith.constant 0 : index
    %c0_7 = arith.constant 0 : index
    %9 = vector.load %arg4[%c0_6, %c0_7] : memref<16x32xf32, #tpu.memory_space<vmem>>, vector<16x32xf32>
    %cst_8 = arith.constant dense<0.000000e+00> : vector<16x256xf32>
    %10 = tpu.matmul %9, %8, %cst_8 {dimension_numbers = #tpu.dot_dimension_numbers<[1], [0], [0], [1], [0, 0, 1, 1], [], []>} : vector<16x32xf32>, vector<32x256xf32>, vector<16x256xf32> -> vector<16x256xf32>
    %c0_9 = arith.constant 0 : index
    %c0_10 = arith.constant 0 : index
    %11 = vector.load %arg5[%c0_9, %c0_10] : memref<16x1xf32, #tpu.memory_space<vmem>>, vector<16x1xf32>
    %12 = vector.broadcast %11 : vector<16x1xf32> to vector<16x256xf32>
    %13 = arith.addf %10, %12 : vector<16x256xf32>
    %cst_11 = arith.constant 0.00999999977 : f32
    %14 = vector.broadcast %cst_11 : f32 to vector<16x256xf32>
    %15 = arith.mulf %14, %13 : vector<16x256xf32>
    %16 = arith.maximumf %13, %15 : vector<16x256xf32>
    %c0_12 = arith.constant 0 : index
    %c0_13 = arith.constant 0 : index
    %17 = vector.load %arg6[%c0_12, %c0_13] : memref<1x16xf32, #tpu.memory_space<vmem>>, vector<1x16xf32>
    %cst_14 = arith.constant dense<0.000000e+00> : vector<1x256xf32>
    %18 = tpu.matmul %17, %16, %cst_14 {dimension_numbers = #tpu.dot_dimension_numbers<[1], [0], [0], [1], [0, 0, 1, 1], [], []>} : vector<1x16xf32>, vector<16x256xf32>, vector<1x256xf32> -> vector<1x256xf32>
    %c0_15 = arith.constant 0 : index
    %c0_16 = arith.constant 0 : index
    %19 = vector.load %arg7[%c0_15, %c0_16] : memref<1x1xf32, #tpu.memory_space<vmem>>, vector<1x1xf32>
    %20 = vector.broadcast %19 : vector<1x1xf32> to vector<1x256xf32>
    %21 = arith.addf %18, %20 : vector<1x256xf32>
    %cst_17 = arith.constant 5.000000e-01 : f32
    %22 = vector.broadcast %cst_17 : f32 to vector<1x256xf32>
    %23 = arith.mulf %22, %21 : vector<1x256xf32>
    %24 = math.tanh %23 : vector<1x256xf32>
    %cst_18 = arith.constant 1.000000e+00 : f32
    %25 = vector.broadcast %cst_18 : f32 to vector<1x256xf32>
    %26 = arith.addf %24, %25 : vector<1x256xf32>
    %cst_19 = arith.constant 5.000000e-01 : f32
    %27 = vector.broadcast %cst_19 : f32 to vector<1x256xf32>
    %28 = arith.mulf %27, %26 : vector<1x256xf32>
    %c0_20 = arith.constant 0 : index
    %c0_21 = arith.constant 0 : index
    %29 = vector.load %arg8[%c0_20, %c0_21] : memref<1x256xf32, #tpu.memory_space<vmem>>, vector<1x256xf32>
    tpu.vector_store %arg8[%c0_20, %c0_21], %28 {strides = array<i32>} : memref<1x256xf32, #tpu.memory_space<vmem>>, vector<1x256xf32>,
    return
  }
  func.func @transform_0(%arg0: i32) -> (i32, i32) {
    %c0_i32 = arith.constant 0 : i32
    %c0_i32_0 = arith.constant 0 : i32
    return %arg0, %c0_i32 : i32, i32
  }
  func.func @transform_1(%arg0: i32) -> (i32, i32) {
    %c0_i32 = arith.constant 0 : i32
    %c0_i32_0 = arith.constant 0 : i32
    %c0_i32_1 = arith.constant 0 : i32
    return %c0_i32, %c0_i32_0 : i32, i32
  }
  func.func @transform_2(%arg0: i32) -> (i32, i32) {
    %c0_i32 = arith.constant 0 : i32
    %c0_i32_0 = arith.constant 0 : i32
    %c0_i32_1 = arith.constant 0 : i32
    return %c0_i32, %c0_i32_0 : i32, i32
  }
  func.func @transform_3(%arg0: i32) -> (i32, i32) {
    %c0_i32 = arith.constant 0 : i32
    %c0_i32_0 = arith.constant 0 : i32
    %c0_i32_1 = arith.constant 0 : i32
    return %c0_i32, %c0_i32_0 : i32, i32
  }
  func.func @transform_4(%arg0: i32) -> (i32, i32) {
    %c0_i32 = arith.constant 0 : i32
    %c0_i32_0 = arith.constant 0 : i32
    %c0_i32_1 = arith.constant 0 : i32
    return %c0_i32, %c0_i32_0 : i32, i32
  }
  func.func @transform_5(%arg0: i32) -> (i32, i32) {
    %c0_i32 = arith.constant 0 : i32
    %c0_i32_0 = arith.constant 0 : i32
    %c0_i32_1 = arith.constant 0 : i32
    return %c0_i32, %c0_i32_0 : i32, i32
  }
  func.func @transform_6(%arg0: i32) -> (i32, i32) {
    %c0_i32 = arith.constant 0 : i32
    %c0_i32_0 = arith.constant 0 : i32
    %c0_i32_1 = arith.constant 0 : i32
    return %c0_i32, %c0_i32_0 : i32, i32
  }
  func.func @transform_7(%arg0: i32) -> (i32, i32) {
    %c0_i32 = arith.constant 0 : i32
    %c0_i32_0 = arith.constant 0 : i32
    return %c0_i32, %arg0 : i32, i32
  }
}

</mosaic_0001>

<bundles_post_ra>
// kernel: tpu_custom_call.1
= control target key start
LH: loop header
LB: loop body
LE: loop exit
PB: predicated region body
PF: predicated region fallthrough
CT: control target
= control target key end

     0   :  { %s957_s0 = inlined_call_operand.vmem [shape: f32[256,16], index: 0, kind: input, shape index: {}]   ;;  %s958_s1 = inlined_call_operand.vmem [shape: f32[32,16], index: 1, kind: input, shape index: {}]   ;;  %s959_s2 = inlined_call_operand.vmem [shape: f32[32,1], index: 2, kind: input, shape index: {}]   ;;  %s960_s3 = inlined_call_operand.vmem [shape: f32[16,32], index: 3, kind: input, shape index: {}]   ;;  %s961_s4 = inlined_call_operand.vmem [shape: f32[16,1], index: 4, kind: input, shape index: {}]   ;;  %s962_s5 = inlined_call_operand.vmem [shape: f32[1,16], index: 5, kind: input, shape index: {}]   ;;  %s963_s6 = inlined_call_operand.<no memory space> [shape: f32[1,1], index: 6, kind: input, shape index: {}]   ;;  %s964_s7 = inlined_call_operand.hbm [shape: f32[1,256], index: 7, kind: output, shape index: {}]  }
   0x1   :  { %v12_v0 = vstv %s963_s6 }
   0x2   :  { %13 = vst [vmem:[#allocation2] sm:$0x1] %v12_v0 }
   0x3   :  { %v49_v1 = vld [vmem:[%s957_s0 + $0x80] sm:$0xff]  ;;  %v50_v2 = vld [vmem:[%s957_s0 + $0x88] sm:$0xff]  ;;  %vm89_vm0 = vcmask 130048   ;;  %v51_v7 = vld [vmem:[%s957_s0 + $0x90] sm:$0xff]  ;;  %v712_v8 = vmov 0  }
   0x4   :  { %v33_v3 = vld [vmem:[%s957_s0] sm:$0xff]  ;;  %v618_v4 = vpack.c.bf16 %v50_v2, %v49_v1  ;;  %vm770_vm1 = vmpackc.low %vm89_vm0, %vm89_vm0  ;;  %v34_v6 = vld [vmem:[%s957_s0 + $0x8] sm:$0xff]  ;;  %682 = vset.pattern.permute.xlu0 %v712_v8  ;;  %683 = vset.pattern.permute.xlu1 %v712_v8 }
   0x5   :  { %v621_v9 = vpack.c.bf16 %v34_v6, %v33_v3  ;;  %v52_v10 = vld [vmem:[%s957_s0 + $0x98] sm:$0xff]  ;;  %v35_v12 = vld [vmem:[%s957_s0 + $0x10] sm:$0xff]  ;;  %v53_v14 = vld [vmem:[%s957_s0 + $0xa0] sm:$0xff] }
   0x6   :  { %620 = vmatprep.subr.msk.bf16.mxu0 %vm770_vm1, %v618_v4  ;;  %v624_v11 = vpack.c.bf16 %v52_v10, %v51_v7  ;;  %v36_v13 = vld [vmem:[%s957_s0 + $0x18] sm:$0xff]  ;;  %v54_v15 = vld [vmem:[%s957_s0 + $0xa8] sm:$0xff]  ;;  %v804_v18 = vld [vmem:[%s958_s1] sm:$0xff] }
   0x7   :  { %623 = vmatpush3.bf16.xpose.msk.msra.mxu0 %vm770_vm1, %v621_v9  ;;  %v627_v16 = vpack.c.bf16 %v36_v13, %v35_v12  ;;  %v630_v17 = vpack.c.bf16 %v54_v15, %v53_v14  ;;  %v37_v19 = vld [vmem:[%s957_s0 + $0x20] sm:$0xff]  ;;  %610 = vmatprep.mubr.msk.f32.mxu0 %vm89_vm0, %v804_v18  ;;  %v38_v21 = vld [vmem:[%s957_s0 + $0x28] sm:$0xff]  ;;  %v55_v22 = vld [vmem:[%s957_s0 + $0xb0] sm:$0xff] }
   0x8   :  { %626 = vmatprep.subr.msk.bf16.mxu0 %vm770_vm1, %v624_v11  ;;  %v65_v20 = vld [vmem:[%s959_s2] sm:$0xff]  ;;  %v67_v23 = vld [vmem:[%s959_s2 + $0x10] sm:$0xff]  ;;  %v56_v24 = vld [vmem:[%s957_s0 + $0xb8] sm:$0xff] }
   0x9   :  { %71 = vperm.xlu0 %682, %v65_v20   ;;  %v66_v25 = vld [vmem:[%s959_s2 + $0x8] sm:$0xff]  ;;  %81 = vperm.xlu1 %683, %v67_v23  }
   0xf   :  { %629 = vmatpush3.bf16.xpose.msk.msra.mxu0 %vm770_vm1, %v627_v16 }
  0x10   :  { %632 = vmatprep.subr.msk.bf16.mxu0 %vm770_vm1, %v630_v17 }
  0x11   :  { %14 = vsyncpa [#allocation4], 0  ;;  %v68_v26 = vld [vmem:[%s959_s2 + $0x18] sm:$0xff]  ;;  %v633_v27 = vpack.c.bf16 %v38_v21, %v37_v19  ;;  %v636_v28 = vpack.c.bf16 %v56_v24, %v55_v22  ;;  %76 = vperm.xlu0 %682, %v66_v25   ;;  %v305_v29 = vld [vmem:[%s961_s4] sm:$0xff]  ;;  %v713_v62 = vmov 0.0   ;;  %vm317_vm2 = vcmask 261120  }
  0x12   :  { %86 = vperm.xlu1 %683, %v68_v26   ;;  %v306_v30 = vld [vmem:[%s961_s4 + $0x8] sm:$0xff]  ;;  %v39_v31 = vld [vmem:[%s957_s0 + $0x30] sm:$0xff]  ;;  %v40_v32 = vld [vmem:[%s957_s0 + $0x38] sm:$0xff]  ;;  %388 = vmatprep.mubr.f32.mxu1 %v713_v62 }
  0x13   :  { %v57_v33 = vld [vmem:[%s957_s0 + $0xc0] sm:$0xff]  ;;  %v58_v34 = vld [vmem:[%s957_s0 + $0xc8] sm:$0xff]  ;;  %v639_v36 = vpack.c.bf16 %v40_v32, %v39_v31  ;;  %v59_v40 = vld [vmem:[%s957_s0 + $0xd0] sm:$0xff] }
  0x14   :  { %v410_v35 = vld [vmem:[#allocation2] sm:$0x1]  ;;  %v642_v37 = vpack.c.bf16 %v58_v34, %v57_v33  ;;  %v42_v39 = vld [vmem:[%s957_s0 + $0x48] sm:$0xff]  ;;  %v60_v41 = vld [vmem:[%s957_s0 + $0xd8] sm:$0xff] }
  0x15   :  { %309 = vperm.xlu0 %682, %v305_v29   ;;  %v41_v38 = vld [vmem:[%s957_s0 + $0x40] sm:$0xff]  ;;  %v648_v43 = vpack.c.bf16 %v60_v41, %v59_v40  ;;  %v43_v44 = vld [vmem:[%s957_s0 + $0x50] sm:$0xff]  ;;  %v44_v45 = vld [vmem:[%s957_s0 + $0x58] sm:$0xff] }
  0x16   :  { %314 = vperm.xlu1 %683, %v306_v30   ;;  %v645_v42 = vpack.c.bf16 %v42_v39, %v41_v38  ;;  %v61_v46 = vld [vmem:[%s957_s0 + $0xe0] sm:$0xff]  ;;  %v62_v47 = vld [vmem:[%s957_s0 + $0xe8] sm:$0xff]  ;;  %v651_v48 = vpack.c.bf16 %v44_v45, %v43_v44  ;;  %v63_v52 = vld [vmem:[%s957_s0 + $0xf0] sm:$0xff] }
  0x17   :  { %635 = vmatpush3.bf16.xpose.msk.msra.mxu0 %vm770_vm1, %v633_v27  ;;  %v654_v49 = vpack.c.bf16 %v62_v47, %v61_v46  ;;  %v45_v50 = vld [vmem:[%s957_s0 + $0x60] sm:$0xff]  ;;  %v46_v51 = vld [vmem:[%s957_s0 + $0x68] sm:$0xff]  ;;  %v64_v53 = vld [vmem:[%s957_s0 + $0xf8] sm:$0xff] }
  0x18   :  { %638 = vmatprep.subr.msk.bf16.mxu0 %vm770_vm1, %v636_v28  ;;  %v657_v54 = vpack.c.bf16 %v46_v51, %v45_v50  ;;  %v660_v55 = vpack.c.bf16 %v64_v53, %v63_v52  ;;  %v47_v56 = vld [vmem:[%s957_s0 + $0x70] sm:$0xff]  ;;  %v48_v57 = vld [vmem:[%s957_s0 + $0x78] sm:$0xff]  ;;  %v30_v59 = vld [vmem:[%s958_s1 + $0x8] sm:$0xff] }
  0x19   :  { %413 = vperm.xlu0 %682, %v410_v35   ;;  %v663_v58 = vpack.c.bf16 %v48_v57, %v47_v56  ;;  %v31_v60 = vld [vmem:[%s958_s1 + $0x10] sm:$0xff]  ;;  %v32_v61 = vld [vmem:[%s958_s1 + $0x18] sm:$0xff]  ;;  %v303_v39 = vld [vmem:[%s960_s3] sm:$0xff] }
  0x1a   :  { %v304_v40 = vld [vmem:[%s960_s3 + $0x8] sm:$0xff] }
  0x1f   :  { %641 = vmatpush3.bf16.xpose.msk.msra.mxu0 %vm770_vm1, %v639_v36 }
  0x20   :  { %644 = vmatprep.subr.msk.bf16.mxu0 %vm770_vm1, %v642_v37 }
  0x27   :  { %647 = vmatpush3.bf16.xpose.msk.msra.mxu0 %vm770_vm1, %v645_v42 }
  0x28   :  { %650 = vmatprep.subr.msk.bf16.mxu0 %vm770_vm1, %v648_v43 }
  0x2f   :  { %653 = vmatpush3.bf16.xpose.msk.msra.mxu0 %vm770_vm1, %v651_v48 }
  0x30   :  { %656 = vmatprep.subr.msk.bf16.mxu0 %vm770_vm1, %v654_v49 }
  0x37   :  { %659 = vmatpush3.bf16.xpose.msk.msra.mxu0 %vm770_vm1, %v657_v54 }
  0x38   :  { %662 = vmatprep.subr.msk.bf16.mxu0 %vm770_vm1, %v660_v55 }
  0x3f   :  { %665 = vmatpush3.bf16.xpose.msk.msra.mxu0 %vm770_vm1, %v663_v58 }
  0x46   :  { %611 = vmatmul.mubr.msk.f32.vlgmr.msra.gmra.mrb[0].mxu0 %vm89_vm0, %v804_v18 }
  0x47   :  { %612 = vmatprep.mubr.msk.f32.mxu0 %vm89_vm0, %v30_v59 }
  0x4a   :  { %613 = vmatmul.mubr.msk.f32.gmra.mrb[2].mxu0 %vm89_vm0, %v30_v59 }
  0x4b   :  { %614 = vmatprep.mubr.msk.f32.mxu0 %vm89_vm0, %v31_v60 }
  0x4e   :  { %615 = vmatmul.mubr.msk.f32.gmra.mrb[4].mxu0 %vm89_vm0, %v31_v60 }
  0x4f   :  { %616 = vmatprep.mubr.msk.f32.mxu0 %vm89_vm0, %v32_v61 }
  0x52   :  { %617 = vmatmul.mubr.msk.f32.gmra.mrb[6].mxu0 %vm89_vm0, %v32_v61  ;;  %v409_v61 = vld [vmem:[%s962_s5] sm:$0x1]  ;;  %s715_s5 = smov [#allocation3]  }
  0x53   :  { %s531_s13 = sshll.u32 %s715_s5, 4  ;;  %s532_s13 = int_to_ptr.vmem [resolvable:$true] %s531_s13 }
  0x54   :  { %s688_s14 = scalar_lea.vmem %s532_s13, 32  ;;  %p693_p1 = scmp.lt.s32.totalorder %s532_s13, %s532_s13 }
  0x55   :  { %p689_p0 = scmp.ne.s32.totalorder %s532_s13, %s688_s14  ;;  %p694_p2 = scmp.lt.s32.totalorder %s688_s14, %s688_s14 }
  0x57   :  { %p695_p3 = por %p694_p2, %p693_p1 }
  0x59   :  { %p696_p4 = pnand %p695_p3, %p689_p0 }
  0x88   :  { %v72_v63 = vpop.permute.xlu0 %71  ;;  %v82_v9 = vpop.permute.xlu1 %81 }
  0x90   :  { %v77_v4 = vpop.permute.xlu0 %76 }
  0x91   :  { %v87_v23 = vpop.permute.xlu1 %86 }
  0x94   :  { %v310_v41 = vpop.permute.xlu0 %309 }
  0x95   :  { %v315_v46 = vpop.permute.xlu1 %314 }
 0x119   :  { %v264_v0 = vpop.f32.mrb[0].mxu0 }
 0x11a   :  { %v265_v1 = vadd.f32 %v264_v0, %v72_v63  ;;  %v266_v2 = vpop.f32.mrb[1].mxu0 }
 0x11b   :  { %v267_v3 = vadd.f32 %v266_v2, %v72_v63 }
 0x11c   :  { %v287_v6 = vmul.f32 0.01, %v265_v1 }
 0x11d   :  { %v270_v5 = vpop.f32.mrb[2].mxu0  ;;  %v288_v10 = vmul.f32 0.01, %v267_v3 }
 0x11e   :  { %v271_v7 = vadd.f32 %v270_v5, %v77_v4  ;;  %v272_v8 = vpop.f32.mrb[3].mxu0  ;;  %v295_v15 = vmax.f32 %v265_v1, %v287_v6  ;;  %v414_v1 = vpop.permute.xlu0 %413 }
 0x11f   :  { %v273_v11 = vadd.f32 %v272_v8, %v77_v4  ;;  %v296_v20 = vmax.f32 %v267_v3, %v288_v10 }
 0x120   :  { %v289_v12 = vmul.f32 0.01, %v271_v7 }
 0x121   :  { %v290_v13 = vmul.f32 0.01, %v273_v11  ;;  %v276_v14 = vpop.f32.mrb[4].mxu0 }
 0x122   :  { %v297_v16 = vmax.f32 %v271_v7, %v289_v12  ;;  %v277_v17 = vadd.f32 %v276_v14, %v82_v9  ;;  %v278_v18 = vpop.f32.mrb[5].mxu0 }
 0x123   :  { %v279_v19 = vadd.f32 %v278_v18, %v82_v9  ;;  %v298_v21 = vmax.f32 %v273_v11, %v290_v13  ;;  %v714_v9 = vmov 1966171168  }
 0x124   :  { %v668_v22 = vpack.c.bf16 %v297_v16, %v295_v15  ;;  %v291_v26 = vmul.f32 0.01, %v277_v17  ;;  %v506_v10 = vunpack.c.l.s4 %v714_v9 }
 0x125   :  { %v282_v24 = vpop.f32.mrb[6].mxu0  ;;  %v666_v25 = vpack.c.bf16 %v298_v21, %v296_v20  ;;  %v292_v29 = vmul.f32 0.01, %v279_v19 }
 0x126   :  { %v283_v27 = vadd.f32 %v282_v24, %v87_v23  ;;  %v284_v28 = vpop.f32.mrb[7].mxu0  ;;  %v299_v33 = vmax.f32 %v277_v17, %v291_v26  ;;  %v507_v12 = vunpack.c.0.s8 %v506_v10 }
 0x127   :  { %v285_v30 = vadd.f32 %v284_v28, %v87_v23  ;;  %667 = vmatprep.subr.bf16.mxu1 %v666_v25  ;;  %v300_v35 = vmax.f32 %v279_v19, %v292_v29 }
 0x128   :  { %v293_v31 = vmul.f32 0.01, %v283_v27  ;;  %669 = vmatpush1.bf16.msra.mxu1 %v668_v22 }
 0x129   :  { %v294_v32 = vmul.f32 0.01, %v285_v30 }
 0x12a   :  { %v301_v34 = vmax.f32 %v283_v27, %v293_v31 }
 0x12b   :  { %v302_v36 = vmax.f32 %v285_v30, %v294_v32 }
 0x12c   :  { %v672_v37 = vpack.c.bf16 %v301_v34, %v299_v33 }
 0x12d   :  { %v670_v38 = vpack.c.bf16 %v302_v36, %v300_v35 }
 0x12f   :  { %671 = vmatprep.subr.bf16.mxu1 %v670_v38 }
 0x130   :  { %673 = vmatpush1.bf16.msra.mxu1 %v672_v37 }
 0x133   :  { %575 = vmatmul.mubr.msk.f32.vlgmr.msra.gmra.mrb[0].mxu1 %vm317_vm2, %v303_v39 }
 0x134   :  { %394 = vmatprep.mubr.f32.mxu1 %v713_v62 }
 0x137   :  { %576 = vmatmul.mubr.msk.f32.gmra.mrb[2].mxu1 %vm317_vm2, %v304_v40 }
 0x138   :  { %487 = vmatprep.mubr.f32.mxu1 %v713_v62  ;;  %v416_v62 = vlaneseq }
 0x13a   :  { %v417_v63 = vshrl.u32 %v416_v62, 7  ;;  %vm522_vm3 = vcmp.lt.s32.totalorder %v416_v62, 256 }
 0x13c   :  { %v418_v0 = vsub.s32 0, %v417_v63  ;;  %v510_v18 = vsub.s32 %v507_v12, %v417_v63 }
 0x13e   :  { %v419_v2 = vrot.slane %v414_v1, %v418_v0 }
 0x206   :  { %v390_v42 = vpop.f32.mrb[0].mxu1 }
 0x207   :  { %v391_v43 = vadd.f32 %v390_v42, %v310_v41  ;;  %v392_v44 = vpop.f32.mrb[1].mxu1 }
 0x208   :  { %v393_v45 = vadd.f32 %v392_v44, %v310_v41 }
 0x209   :  { %v401_v48 = vmul.f32 0.01, %v391_v43 }
 0x20a   :  { %v396_v47 = vpop.f32.mrb[2].mxu1  ;;  %v402_v51 = vmul.f32 0.01, %v393_v45 }
 0x20b   :  { %v397_v49 = vadd.f32 %v396_v47, %v315_v46  ;;  %v398_v50 = vpop.f32.mrb[3].mxu1  ;;  %v405_v55 = vmax.f32 %v391_v43, %v401_v48 }
 0x20c   :  { %v399_v52 = vadd.f32 %v398_v50, %v315_v46  ;;  %v406_v57 = vmax.f32 %v393_v45, %v402_v51 }
 0x20d   :  { %v403_v53 = vmul.f32 0.01, %v397_v49 }
 0x20e   :  { %v404_v54 = vmul.f32 0.01, %v399_v52 }
 0x20f   :  { %v407_v56 = vmax.f32 %v397_v49, %v403_v53 }
 0x210   :  { %v408_v58 = vmax.f32 %v399_v52, %v404_v54 }
 0x211   :  { %v676_v59 = vpack.c.bf16 %v407_v56, %v405_v55 }
 0x212   :  { %v674_v60 = vpack.c.bf16 %v408_v58, %v406_v57 }
 0x214   :  { %675 = vmatprep.subr.bf16.mxu1 %v674_v60 }
 0x215   :  { %677 = vmatpush1.bf16.msra.mxu1 %v676_v59 }
 0x218   :  { %577 = vmatmul.mubr.msk.f32.vlgmr.msra.gmra.mrb[4].mxu1 %vm89_vm0, %v409_v61 }
 0x2eb   :  { %v489_v3 = vpop.f32.mrb[4].mxu1 }
 0x2ec   :  { %v490_v4 = vadd.f32 %v489_v3, %v419_v2  ;;  %v491_v5 = vpop.f32.mrb[5].mxu1 }
 0x2ed   :  { %v492_v6 = vadd.f32 %v491_v5, %v419_v2 }
 0x2ee   :  { %v494_v7 = vmul.f32 0.5, %v490_v4 }
 0x2ef   :  { %v495_v8 = vmul.f32 0.5, %v492_v6 }
 0x2f0   :  { %684 = vtanh.f32 %v494_v7 }
 0x2f1   :  { %686 = vtanh.f32 %v495_v8 }
 0x2fa   :  { %v685_v11 = vpop.eup %684 }
 0x2fb   :  { %v687_v13 = vpop.eup %686  ;;  %v498_v14 = vadd.f32 1.0, %v685_v11 }
 0x2fc   :  { %v499_v15 = vadd.f32 1.0, %v687_v13 }
 0x2fd   :  { %v500_v16 = vmul.f32 0.5, %v498_v14 }
 0x2fe   :  { %v501_v17 = vmul.f32 0.5, %v499_v15 }
 0x300   :  { %v504_v19 = vcombine.low %v500_v16, %v501_v17 }
 0x302   :  { %v511_v20 = vrot.slane %v504_v19, %v510_v18 }
 0x304   :  { %v518_v21 = vrot.slane %v511_v20, %v510_v18 }
 0x306   :  { %524 = vst.msk [vmem:[#allocation3] sm:$0x3] %vm522_vm3, %v518_v21 }
 0x307   :  { %699 = shalt.err (!%p696_p4)
}
 0x308   :  { %s700_s17 = scalar_lea.hbm %s964_s7, 32 }
 0x309   :  { %p701_p5 = scmp.ne.s32.totalorder %s964_s7, %s700_s17  ;;  %p704_p6 = scmp.lt.u32.totalorder %s700_s17, %s964_s7 }
 0x30b   :  { %p706_p7 = pnand %p704_p6, %p701_p5 }
 0x30d   :  { %709 = shalt.err (!%p706_p7)
}
 0x30e   :  { %534 = dma.vmem_to_hbm [thread:$0]  %s532_s13, 32, %s964_s7, [#allocation4]  }
 0x30f   :  { %710 = dma.done.wait [#allocation4], 32  }
 0x310   :  { %711 = vsyncadd [#allocation4], 4294967264 }
 0x311   :  { %538 = vsyncpa [#allocation4], 1 }

</bundles_post_ra>
